<compile_context>
chip_gen: v7x
topology: tpu7x:2x2x1
jax: 0.10.0
libtpu: 0.0.40
codegen_flags: <defaults>
</compile_context>

<pallas_src>
import functools
import math

import jax
import jax.numpy as jnp
import numpy as np
from jax import lax
from jax.experimental import pallas as pl
from jax.experimental.pallas import tpu as pltpu

_LANES = 128
_ONES_LANE = _LANES - 1      # activation lane carrying the constant 1.0
_BIAS_ROW = _LANES - 1       # weight-block row carrying the bias
LOG_SIG_MIN = -20.0          # garage/PEARL TanhGaussianMLPPolicy clamp
LOG_SIG_MAX = 2.0


# ---------------------------------------------------------------------------
# Parameter packing: seven lane/sublane-dense 128x128 f32 blocks, biases folded.
# Done ONCE outside jit; the fused kernel sees a single resident VMEM input.
# ---------------------------------------------------------------------------
def pack_params(enc_params, pol_params, obs_dim, latent_dim):
    """Block k lives at rows [128k, 128(k+1)).  Rows [0, fan_in) hold the
    weight, row 127 holds the bias, and [127, 127] == 1.0 when the block must
    propagate the activations' constant ones-lane to the next layer (the bias
    add then happens for free inside the MXU accumulation).

      0: enc W1+b1   1: enc W2+b2   2: enc W3+b3
      3: pol W1[:obs_dim]+b1   (obs half of the split first layer)
      4: pol W1[obs_dim:obs_dim+L]   (task_z half, rows [0, L), no bias)
      5: pol W2+b2   6: pol W3+b3
    """
    w1e, b1e, w2e, b2e, w3e, b3e = enc_params
    w1p, b1p, w2p, b2p, w3p, b3p = pol_params
    L = latent_dim

    def block(w, b, ones_pass):
        w = np.asarray(w, np.float32)
        assert w.shape[0] <= _BIAS_ROW and w.shape[1] <= _LANES
        blk = np.zeros((_LANES, _LANES), np.float32)
        blk[:w.shape[0], :w.shape[1]] = w
        if b is not None:
            b = np.asarray(b, np.float32)
            blk[_BIAS_ROW, :b.shape[0]] = b
        if ones_pass:
            assert w.shape[1] < _ONES_LANE
            blk[_BIAS_ROW, _ONES_LANE] = 1.0
        return blk

    w1p = np.asarray(w1p, np.float32)
    blocks = [
        block(w1e, b1e, True),
        block(w2e, b2e, True),
        block(w3e, b3e, False),
        block(w1p[:obs_dim], b1p, True),
        block(w1p[obs_dim:obs_dim + L], None, False),
        block(w2p, b2p, True),
        block(w3p, b3p, False),
    ]
    return jnp.asarray(np.concatenate(blocks, axis=0))       # (7*128, 128)


def _lane_concat(parts, width=_LANES):
    """Concatenate along lanes and zero-pad to a full 128-lane slab."""
    used = sum(int(p.shape[-1]) for p in parts)
    if used < width:
        parts = list(parts) + [jnp.zeros((parts[0].shape[0], width - used),
                                         jnp.float32)]
    return jnp.concatenate(parts, axis=-1)


# ---------------------------------------------------------------------------
# Fused forward kernel (one row tile of the policy batch per grid step)
# ---------------------------------------------------------------------------
def _pearl_fused_kernel(ctx_ref, seg_ref, epsz_ref, params_ref,
                        obs_ref, epsa_ref, rep_ref,
                        pol_ref, post_ref, *, latent_dim, act_dim):
    L, A = latent_dim, act_dim

    def blk(k):
        return params_ref[k * _LANES:(k + 1) * _LANES, :]

    def mm(x, w):
        # f32 MXU matmul with f32 accumulation (bf16 operand cast only pays
        # once K,N reach 128/256 — see module TODO).
        return jnp.dot(x, w, preferred_element_type=jnp.float32)

    # ---- context encoder (recomputed per row tile; T*N << T*B) -------------
    # ctx is lane-dense (TN,128) with lane 127 == 1.0; biases live in row 127
    # of each weight block, so the bias add happens inside the MXU.
    h = jnp.maximum(mm(ctx_ref[...], blk(0)), 0.0)
    h = jnp.maximum(mm(h, blk(1)), 0.0)
    enc = mm(h, blk(2))                          # (TN,128); lanes [0,2L) valid
    mu = enc[:, 0:L]
    presig = enc[:, L:2 * L]

    # ---- q(z|c): product of Gaussians over each task's N transitions -------
    sp = jnp.maximum(presig, 0.0) + jnp.log1p(jnp.exp(-jnp.abs(presig)))
    sig2 = jnp.maximum(sp, 1e-7)                 # clamp(min=1e-7)
    inv = 1.0 / sig2                             # exact: only TN*L elements
    sum_inv = mm(seg_ref[...], inv)              # (T, L) per-task segment sum
    sum_mu_inv = mm(seg_ref[...], mu * inv)
    z_var = 1.0 / sum_inv                        # exact reciprocal for output
    z_mean = z_var * sum_mu_inv
    z = z_mean + lax.rsqrt(sum_inv) * epsz_ref[:, 0:L]        # rsample

    # ---- policy on [obs, task_z]: split first-layer matmul (no concat) -----
    task_z = mm(rep_ref[...], z)                 # (TM, L) repeat-per-task
    h = jnp.maximum(mm(obs_ref[...], blk(3))
                    + mm(task_z, params_ref[4 * _LANES:4 * _LANES + L, :]),
                    0.0)
    h = jnp.maximum(mm(h, blk(5)), 0.0)
    pol = mm(h, blk(6))                          # (TM,128); lanes [0,2A) valid

    p_mean = pol[:, 0:A]
    p_log_std = jnp.clip(pol[:, A:2 * A], LOG_SIG_MIN, LOG_SIG_MAX)
    std = jnp.exp(p_log_std)
    eps_a = epsa_ref[:, 0:A]
    pre = p_mean + std * eps_a                   # pre-tanh rsample
    act = jnp.tanh(pre)
    # (pre - mean)/std == eps_a by construction (std already clamped above).
    nlp = -0.5 * eps_a * eps_a - p_log_std - 0.5 * math.log(2.0 * math.pi)
    log_pi = jnp.sum(nlp - jnp.log(1.0 - act * act + 1e-6),
                     axis=-1, keepdims=True)     # (TM, 1)

    # ---- exactly one unmasked full-width store per output ref --------------
    pol_ref[...] = _lane_concat(
        [act, pre, jnp.tanh(p_mean), p_log_std, log_pi, task_z])
    post_ref[...] = _lane_concat([z_mean, z_var, z])[None]


# ---------------------------------------------------------------------------
# Wrapper reproducing ContextConditionedPolicy.forward (use_ib=True)
# ---------------------------------------------------------------------------
def _pad_to_lanes_with_ones(x):
    """(rows, d) -> (rows, 128): lanes [0,d)=x, lane 127 = 1.0, rest 0."""
    rows, d = x.shape
    assert d < _ONES_LANE
    return jnp.concatenate(
        [x.astype(jnp.float32),
         jnp.zeros((rows, _ONES_LANE - d), jnp.float32),
         jnp.ones((rows, 1), jnp.float32)], axis=1)


def _draw_eps(key, tb, t):
    k_a, k_z = jax.random.split(key)
    return (jax.random.normal(k_a, (tb, _LANES), jnp.float32),
            jax.random.normal(k_z, (t, _LANES), jnp.float32))


def context_conditioned_policy_forward(obs, context, params_slab, key, *,
                                       latent_dim, act_dim, row_tile=256):
    """obs: (T, B, obs_dim), context: (T, N, ctx_dim).  Returns
    ((actions, mean, log_std, log_pi, pre_tanh), task_z, (z_means, z_vars))."""
    T, B, obs_dim = obs.shape
    _, N, ctx_dim = context.shape
    A, L = act_dim, latent_dim
    TN, TB = T * N, T * B
    assert 4 * A + 1 + L <= _LANES and 3 * L <= _LANES

    tm = min(row_tile, TB)
    assert TB % tm == 0 and tm % 8 == 0, (TB, tm)
    ntiles = TB // tm

    ctx_pad = _pad_to_lanes_with_ones(context.reshape(TN, ctx_dim))
    obs_pad = _pad_to_lanes_with_ones(obs.reshape(TB, obs_dim))
    eps_a, eps_z = _draw_eps(key, TB, T)

    # 0/1 selection matrices (static shapes -> constant-folded by XLA).
    task_of_ctx = jnp.repeat(jnp.arange(T), N)
    seg = (jnp.arange(T)[:, None] == task_of_ctx[None, :]).astype(jnp.float32)
    task_of_row = jnp.repeat(jnp.arange(T), B)
    rep = (task_of_row[:, None] == jnp.arange(T)[None, :]).astype(jnp.float32)

    kernel = functools.partial(_pearl_fused_kernel, latent_dim=L, act_dim=A)
    resident = lambda i: (0, 0)
    grid_spec = pltpu.PrefetchScalarGridSpec(
        num_scalar_prefetch=0,
        grid=(ntiles,),
        in_specs=[
            pl.BlockSpec((TN, _LANES), resident),            # context (resident)
            pl.BlockSpec((T, TN), resident),                 # seg      (resident)
            pl.BlockSpec((T, _LANES), resident),             # eps_z    (resident)
            pl.BlockSpec(tuple(params_slab.shape), resident),  # weights (resident)
            pl.BlockSpec((tm, _LANES), lambda i: (i, 0)),    # obs row tile
            pl.BlockSpec((tm, _LANES), lambda i: (i, 0)),    # eps_a row tile
            pl.BlockSpec((tm, T), lambda i: (i, 0)),         # rep row tile
        ],
        out_specs=(
            pl.BlockSpec((tm, _LANES), lambda i: (i, 0)),        # policy slab
            pl.BlockSpec((1, T, _LANES), lambda i: (i, 0, 0)),   # posterior slab
        ),
    )
    pol_slab, post_slab = pl.pallas_call(
        kernel,
        out_shape=(jax.ShapeDtypeStruct((TB, _LANES), jnp.float32),
                   jax.ShapeDtypeStruct((ntiles, T, _LANES), jnp.float32)),
        grid_spec=grid_spec,
        compiler_params=pltpu.CompilerParams(
            dimension_semantics=("parallel",),     # megacore-shardable on v7x
            vmem_limit_bytes=32 * 1024 * 1024),
    )(ctx_pad, seg, eps_z, params_slab, obs_pad, eps_a, rep)

    actions = pol_slab[:, 0:A]
    pre_tanh = pol_slab[:, A:2 * A]
    d_mean = pol_slab[:, 2 * A:3 * A]
    d_log_std = pol_slab[:, 3 * A:4 * A]
    log_pi = pol_slab[:, 4 * A:4 * A + 1]
    task_z = pol_slab[:, 4 * A + 1:4 * A + 1 + L]
    post = post_slab[0]                        # identical per-tile replicas
    z_means = post[:, 0:L]
    z_vars = post[:, L:2 * L]
    return (actions, d_mean, d_log_std, log_pi, pre_tanh), task_z, (z_means, z_vars)


# ---------------------------------------------------------------------------
# Pure-JAX reference (correctness check) + deterministic example run
# ---------------------------------------------------------------------------
def _reference_forward(obs, context, enc_params, pol_params, latent_dim,
                       eps_a, eps_z):
    T, B, obs_dim = obs.shape
    _, N, ctx_dim = context.shape

    def mlp(x, p):
        w1, b1, w2, b2, w3, b3 = p
        h = jax.nn.relu(x @ w1 + b1)
        h = jax.nn.relu(h @ w2 + b2)
        return h @ w3 + b3

    enc = mlp(context.reshape(T * N, ctx_dim), enc_params).reshape(T, N, -1)
    mu = enc[..., :latent_dim]
    sig2 = jnp.maximum(jax.nn.softplus(enc[..., latent_dim:]), 1e-7)
    var = 1.0 / jnp.sum(1.0 / sig2, axis=1)
    mean = var * jnp.sum(mu / sig2, axis=1)

    A = pol_params[4].shape[1] // 2
    z = mean + jnp.sqrt(var) * eps_z[:, :latent_dim]
    task_z = jnp.repeat(z, B, axis=0)
    obs_z = jnp.concatenate([obs.reshape(T * B, -1), task_z], axis=1)

    pol = mlp(obs_z, pol_params)
    p_mean = pol[:, :A]
    p_log_std = jnp.clip(pol[:, A:], LOG_SIG_MIN, LOG_SIG_MAX)
    std = jnp.exp(p_log_std)
    ea = eps_a[:, :A]
    pre = p_mean + std * ea
    act = jnp.tanh(pre)
    nlp = -0.5 * ea ** 2 - p_log_std - 0.5 * math.log(2.0 * math.pi)
    log_pi = jnp.sum(nlp - jnp.log(1.0 - act ** 2 + 1e-6), axis=-1, keepdims=True)
    return (act, jnp.tanh(p_mean), p_log_std, log_pi, pre), task_z, (mean, var)


def _init_mlp(key, dims, scale=0.1):
    params = []
    for d_in, d_out in zip(dims[:-1], dims[1:]):
        key, kw, kb = jax.random.split(key, 3)
        params.append(scale * jax.random.normal(kw, (d_in, d_out), dtype=jnp.float32))
        params.append(scale * jax.random.normal(kb, (d_out,), dtype=jnp.float32))
    return tuple(params)


if __name__ == "__main__":
    T, B, N = 2, 8, 8
    obs_dim, act_dim, latent_dim, hidden = 11, 4, 5, 32
    ctx_dim = obs_dim + act_dim + 1          # use_next_obs=False -> [o, a, r]

    key = jax.random.PRNGKey(0)
    key, k_obs, k_ctx, k_enc, k_pol, k_fwd = jax.random.split(key, 6)

    obs = jax.random.normal(k_obs, (T, B, obs_dim), dtype=jnp.float32)
    context = jax.random.normal(k_ctx, (T, N, ctx_dim), dtype=jnp.float32)

    enc_params = _init_mlp(k_enc, (ctx_dim, hidden, hidden, 2 * latent_dim))
    pol_params = _init_mlp(k_pol, (obs_dim + latent_dim, hidden, hidden, 2 * act_dim))

    # Pack all weights/biases once, outside jit (one resident parameter DMA).
    params_slab = jax.block_until_ready(
        pack_params(enc_params, pol_params, obs_dim, latent_dim))

    fwd = jax.jit(functools.partial(
        context_conditioned_policy_forward,
        latent_dim=latent_dim, act_dim=act_dim, row_tile=8))   # grid = (2,)

    (actions, mean, log_std, log_pi, pre_tanh), task_z, (z_means, z_vars) = fwd(
        obs, context, params_slab, k_fwd)
    jax.block_until_ready((actions, mean, log_std, log_pi, pre_tanh, task_z,
                           z_means, z_vars))

    assert actions.shape == (T * B, act_dim)
    assert pre_tanh.shape == (T * B, act_dim)
    assert mean.shape == (T * B, act_dim) and log_std.shape == (T * B, act_dim)
    assert log_pi.shape == (T * B, 1)
    assert task_z.shape == (T * B, latent_dim)
    assert z_means.shape == (T, latent_dim) and z_vars.shape == (T, latent_dim)

    # Correctness vs pure-JAX reference (exact posterior math in-kernel now,
    # so the tolerance is much tighter than the previous 2e-2).
    eps_a, eps_z = _draw_eps(k_fwd, T * B, T)
    (r_act, r_mean, r_lstd, r_lpi, r_pre), r_tz, (r_zm, r_zv) = _reference_forward(
        obs, context, enc_params, pol_params, latent_dim, eps_a, eps_z)
    for got, ref in [(actions, r_act), (mean, r_mean), (log_std, r_lstd),
                     (log_pi, r_lpi), (pre_tanh, r_pre), (task_z, r_tz),
                     (z_means, r_zm), (z_vars, r_zv)]:
        np.testing.assert_allclose(np.asarray(got), np.asarray(ref),
                                   rtol=2e-3, atol=2e-3)

    print("KERNEL_OK")
</pallas_src>

<mosaic_0001>
module attributes {stable_mosaic.version = 11 : i64} {
  func.func @_pearl_fused_kernel(%arg0: i32, %arg1: memref<16x128xf32, #tpu.memory_space<vmem>>, %arg2: memref<2x16xf32, #tpu.memory_space<vmem>>, %arg3: memref<2x128xf32, #tpu.memory_space<vmem>>, %arg4: memref<896x128xf32, #tpu.memory_space<vmem>>, %arg5: memref<8x128xf32, #tpu.memory_space<vmem>>, %arg6: memref<8x128xf32, #tpu.memory_space<vmem>>, %arg7: memref<8x2xf32, #tpu.memory_space<vmem>>, %arg8: memref<8x128xf32, #tpu.memory_space<vmem>>, %arg9: memref<1x2x128xf32, #tpu.memory_space<vmem>>) attributes {dimension_semantics = [#tpu.dimension_semantics<parallel>], iteration_bounds = array<i64: 2>, scalar_prefetch = 0 : i64, scratch_operands = 0 : i64, tpu.core_type = #tpu.core_type<tc>, window_params = [{pipeline_mode = #tpu.pipeline_mode<synchronous>, transform_indices = @transform_0, window_bounds = array<i64: 16, 128>}, {pipeline_mode = #tpu.pipeline_mode<synchronous>, transform_indices = @transform_1, window_bounds = array<i64: 2, 16>}, {pipeline_mode = #tpu.pipeline_mode<synchronous>, transform_indices = @transform_2, window_bounds = array<i64: 2, 128>}, {pipeline_mode = #tpu.pipeline_mode<synchronous>, transform_indices = @transform_3, window_bounds = array<i64: 896, 128>}, {transform_indices = @transform_4, window_bounds = array<i64: 8, 128>}, {transform_indices = @transform_5, window_bounds = array<i64: 8, 128>}, {transform_indices = @transform_6, window_bounds = array<i64: 8, 2>}, {transform_indices = @transform_7, window_bounds = array<i64: 8, 128>}, {transform_indices = @transform_8, window_bounds = array<i64: 1, 2, 128>}]} {
    %c0 = arith.constant 0 : index
    %c0_0 = arith.constant 0 : index
    %0 = vector.load %arg1[%c0, %c0_0] : memref<16x128xf32, #tpu.memory_space<vmem>>, vector<16x128xf32>
    %c0_1 = arith.constant 0 : index
    %c0_2 = arith.constant 0 : index
    %1 = vector.load %arg4[%c0_1, %c0_2] : memref<896x128xf32, #tpu.memory_space<vmem>>, vector<128x128xf32>
    %cst = arith.constant dense<0.000000e+00> : vector<16x128xf32>
    %2 = tpu.matmul %0, %1, %cst {dimension_numbers = #tpu.dot_dimension_numbers<[1], [0], [0], [1], [0, 0, 1, 1], [], []>} : vector<16x128xf32>, vector<128x128xf32>, vector<16x128xf32> -> vector<16x128xf32>
    %cst_3 = arith.constant 0.000000e+00 : f32
    %3 = vector.broadcast %cst_3 : f32 to vector<16x128xf32>
    %4 = arith.maximumf %2, %3 : vector<16x128xf32>
    %c128 = arith.constant 128 : index
    %c0_4 = arith.constant 0 : index
    %5 = vector.load %arg4[%c128, %c0_4] : memref<896x128xf32, #tpu.memory_space<vmem>>, vector<128x128xf32>
    %cst_5 = arith.constant dense<0.000000e+00> : vector<16x128xf32>
    %6 = tpu.matmul %4, %5, %cst_5 {dimension_numbers = #tpu.dot_dimension_numbers<[1], [0], [0], [1], [0, 0, 1, 1], [], []>} : vector<16x128xf32>, vector<128x128xf32>, vector<16x128xf32> -> vector<16x128xf32>
    %cst_6 = arith.constant 0.000000e+00 : f32
    %7 = vector.broadcast %cst_6 : f32 to vector<16x128xf32>
    %8 = arith.maximumf %6, %7 : vector<16x128xf32>
    %c256 = arith.constant 256 : index
    %c0_7 = arith.constant 0 : index
    %9 = vector.load %arg4[%c256, %c0_7] : memref<896x128xf32, #tpu.memory_space<vmem>>, vector<128x128xf32>
    %cst_8 = arith.constant dense<0.000000e+00> : vector<16x128xf32>
    %10 = tpu.matmul %8, %9, %cst_8 {dimension_numbers = #tpu.dot_dimension_numbers<[1], [0], [0], [1], [0, 0, 1, 1], [], []>} : vector<16x128xf32>, vector<128x128xf32>, vector<16x128xf32> -> vector<16x128xf32>
    %11 = vector.extract_strided_slice %10 {offsets = [0, 0], sizes = [16, 5], strides = [1, 1]} : vector<16x128xf32> to vector<16x5xf32>
    %12 = vector.extract_strided_slice %10 {offsets = [0, 5], sizes = [16, 5], strides = [1, 1]} : vector<16x128xf32> to vector<16x5xf32>
    %cst_9 = arith.constant 0.000000e+00 : f32
    %13 = vector.broadcast %cst_9 : f32 to vector<16x5xf32>
    %14 = arith.maximumf %12, %13 : vector<16x5xf32>
    %15 = math.absf %12 : vector<16x5xf32>
    %cst_10 = arith.constant 0.000000e+00 : f32
    %16 = vector.broadcast %cst_10 : f32 to vector<16x5xf32>
    %17 = arith.subf %16, %15 : vector<16x5xf32>
    %18 = math.exp %17 : vector<16x5xf32>
    %19 = math.log1p %18 : vector<16x5xf32>
    %20 = arith.addf %14, %19 : vector<16x5xf32>
    %cst_11 = arith.constant 1.000000e-07 : f32
    %21 = vector.broadcast %cst_11 : f32 to vector<16x5xf32>
    %22 = arith.maximumf %20, %21 : vector<16x5xf32>
    %cst_12 = arith.constant 1.000000e+00 : f32
    %23 = vector.broadcast %cst_12 : f32 to vector<16x5xf32>
    %24 = arith.divf %23, %22 : vector<16x5xf32>
    %c0_13 = arith.constant 0 : index
    %c0_14 = arith.constant 0 : index
    %25 = vector.load %arg2[%c0_13, %c0_14] : memref<2x16xf32, #tpu.memory_space<vmem>>, vector<2x16xf32>
    %cst_15 = arith.constant dense<0.000000e+00> : vector<2x5xf32>
    %26 = tpu.matmul %25, %24, %cst_15 {dimension_numbers = #tpu.dot_dimension_numbers<[1], [0], [0], [1], [0, 0, 1, 1], [], []>} : vector<2x16xf32>, vector<16x5xf32>, vector<2x5xf32> -> vector<2x5xf32>
    %c0_16 = arith.constant 0 : index
    %c0_17 = arith.constant 0 : index
    %27 = vector.load %arg2[%c0_16, %c0_17] : memref<2x16xf32, #tpu.memory_space<vmem>>, vector<2x16xf32>
    %28 = arith.mulf %11, %24 : vector<16x5xf32>
    %cst_18 = arith.constant dense<0.000000e+00> : vector<2x5xf32>
    %29 = tpu.matmul %27, %28, %cst_18 {dimension_numbers = #tpu.dot_dimension_numbers<[1], [0], [0], [1], [0, 0, 1, 1], [], []>} : vector<2x16xf32>, vector<16x5xf32>, vector<2x5xf32> -> vector<2x5xf32>
    %cst_19 = arith.constant 1.000000e+00 : f32
    %30 = vector.broadcast %cst_19 : f32 to vector<2x5xf32>
    %31 = arith.divf %30, %26 : vector<2x5xf32>
    %32 = arith.mulf %31, %29 : vector<2x5xf32>
    %33 = math.rsqrt %26 : vector<2x5xf32>
    %c0_20 = arith.constant 0 : index
    %c0_21 = arith.constant 0 : index
    %34 = vector.load %arg3[%c0_20, %c0_21] : memref<2x128xf32, #tpu.memory_space<vmem>>, vector<2x5xf32>
    %35 = arith.mulf %33, %34 : vector<2x5xf32>
    %36 = arith.addf %32, %35 : vector<2x5xf32>
    %c0_22 = arith.constant 0 : index
    %c0_23 = arith.constant 0 : index
    %37 = vector.load %arg7[%c0_22, %c0_23] : memref<8x2xf32, #tpu.memory_space<vmem>>, vector<8x2xf32>
    %cst_24 = arith.constant dense<0.000000e+00> : vector<8x5xf32>
    %38 = tpu.matmul %37, %36, %cst_24 {dimension_numbers = #tpu.dot_dimension_numbers<[1], [0], [0], [1], [0, 0, 1, 1], [], []>} : vector<8x2xf32>, vector<2x5xf32>, vector<8x5xf32> -> vector<8x5xf32>
    %c0_25 = arith.constant 0 : index
    %c0_26 = arith.constant 0 : index
    %39 = vector.load %arg5[%c0_25, %c0_26] : memref<8x128xf32, #tpu.memory_space<vmem>>, vector<8x128xf32>
    %c384 = arith.constant 384 : index
    %c0_27 = arith.constant 0 : index
    %40 = vector.load %arg4[%c384, %c0_27] : memref<896x128xf32, #tpu.memory_space<vmem>>, vector<128x128xf32>
    %cst_28 = arith.constant dense<0.000000e+00> : vector<8x128xf32>
    %41 = tpu.matmul %39, %40, %cst_28 {dimension_numbers = #tpu.dot_dimension_numbers<[1], [0], [0], [1], [0, 0, 1, 1], [], []>} : vector<8x128xf32>, vector<128x128xf32>, vector<8x128xf32> -> vector<8x128xf32>
    %c512 = arith.constant 512 : index
    %c0_29 = arith.constant 0 : index
    %42 = vector.load %arg4[%c512, %c0_29] : memref<896x128xf32, #tpu.memory_space<vmem>>, vector<5x128xf32>
    %cst_30 = arith.constant dense<0.000000e+00> : vector<8x128xf32>
    %43 = tpu.matmul %38, %42, %cst_30 {dimension_numbers = #tpu.dot_dimension_numbers<[1], [0], [0], [1], [0, 0, 1, 1], [], []>} : vector<8x5xf32>, vector<5x128xf32>, vector<8x128xf32> -> vector<8x128xf32>
    %44 = arith.addf %41, %43 : vector<8x128xf32>
    %cst_31 = arith.constant 0.000000e+00 : f32
    %45 = vector.broadcast %cst_31 : f32 to vector<8x128xf32>
    %46 = arith.maximumf %44, %45 : vector<8x128xf32>
    %c640 = arith.constant 640 : index
    %c0_32 = arith.constant 0 : index
    %47 = vector.load %arg4[%c640, %c0_32] : memref<896x128xf32, #tpu.memory_space<vmem>>, vector<128x128xf32>
    %cst_33 = arith.constant dense<0.000000e+00> : vector<8x128xf32>
    %48 = tpu.matmul %46, %47, %cst_33 {dimension_numbers = #tpu.dot_dimension_numbers<[1], [0], [0], [1], [0, 0, 1, 1], [], []>} : vector<8x128xf32>, vector<128x128xf32>, vector<8x128xf32> -> vector<8x128xf32>
    %cst_34 = arith.constant 0.000000e+00 : f32
    %49 = vector.broadcast %cst_34 : f32 to vector<8x128xf32>
    %50 = arith.maximumf %48, %49 : vector<8x128xf32>
    %c768 = arith.constant 768 : index
    %c0_35 = arith.constant 0 : index
    %51 = vector.load %arg4[%c768, %c0_35] : memref<896x128xf32, #tpu.memory_space<vmem>>, vector<128x128xf32>
    %cst_36 = arith.constant dense<0.000000e+00> : vector<8x128xf32>
    %52 = tpu.matmul %50, %51, %cst_36 {dimension_numbers = #tpu.dot_dimension_numbers<[1], [0], [0], [1], [0, 0, 1, 1], [], []>} : vector<8x128xf32>, vector<128x128xf32>, vector<8x128xf32> -> vector<8x128xf32>
    %53 = vector.extract_strided_slice %52 {offsets = [0, 0], sizes = [8, 4], strides = [1, 1]} : vector<8x128xf32> to vector<8x4xf32>
    %54 = vector.extract_strided_slice %52 {offsets = [0, 4], sizes = [8, 4], strides = [1, 1]} : vector<8x128xf32> to vector<8x4xf32>
    %cst_37 = arith.constant -2.000000e+01 : f32
    %cst_38 = arith.constant 2.000000e+00 : f32
    %55 = vector.broadcast %cst_37 : f32 to vector<8x4xf32>
    %56 = arith.maximumf %55, %54 : vector<8x4xf32>
    %57 = vector.broadcast %cst_38 : f32 to vector<8x4xf32>
    %58 = arith.minimumf %57, %56 : vector<8x4xf32>
    %59 = math.exp %58 : vector<8x4xf32>
    %c0_39 = arith.constant 0 : index
    %c0_40 = arith.constant 0 : index
    %60 = vector.load %arg6[%c0_39, %c0_40] : memref<8x128xf32, #tpu.memory_space<vmem>>, vector<8x4xf32>
    %61 = arith.mulf %59, %60 : vector<8x4xf32>
    %62 = arith.addf %53, %61 : vector<8x4xf32>
    %63 = math.tanh %62 : vector<8x4xf32>
    %cst_41 = arith.constant -5.000000e-01 : f32
    %64 = vector.broadcast %cst_41 : f32 to vector<8x4xf32>
    %65 = arith.mulf %64, %60 : vector<8x4xf32>
    %66 = arith.mulf %65, %60 : vector<8x4xf32>
    %67 = arith.subf %66, %58 : vector<8x4xf32>
    %cst_42 = arith.constant 0.918938517 : f32
    %68 = vector.broadcast %cst_42 : f32 to vector<8x4xf32>
    %69 = arith.subf %67, %68 : vector<8x4xf32>
    %70 = arith.mulf %63, %63 : vector<8x4xf32>
    %cst_43 = arith.constant 1.000000e+00 : f32
    %71 = vector.broadcast %cst_43 : f32 to vector<8x4xf32>
    %72 = arith.subf %71, %70 : vector<8x4xf32>
    %cst_44 = arith.constant 9.99999997E-7 : f32
    %73 = vector.broadcast %cst_44 : f32 to vector<8x4xf32>
    %74 = arith.addf %72, %73 : vector<8x4xf32>
    %75 = math.log %74 : vector<8x4xf32>
    %76 = arith.subf %69, %75 : vector<8x4xf32>
    %cst_45 = arith.constant dense<0.000000e+00> : vector<8xf32>
    %77 = vector.multi_reduction <add>, %76, %cst_45 [1] : vector<8x4xf32> to vector<8xf32>
    %78 = vector.shape_cast %77 : vector<8xf32> to vector<8x1xf32>
    %79 = math.tanh %53 : vector<8x4xf32>
    %cst_46 = arith.constant 0.000000e+00 : f32
    %80 = vector.broadcast %cst_46 : f32 to vector<8x106xf32>
    %81 = tpu.concatenate %63, %62, %79, %58, %78, %38, %80 in 1 : vector<8x4xf32>, vector<8x4xf32>, vector<8x4xf32>, vector<8x4xf32>, vector<8x1xf32>, vector<8x5xf32>, vector<8x106xf32> -> vector<8x128xf32>
    %c0_47 = arith.constant 0 : index
    %c0_48 = arith.constant 0 : index
    %82 = vector.load %arg8[%c0_47, %c0_48] : memref<8x128xf32, #tpu.memory_space<vmem>>, vector<8x128xf32>
    tpu.vector_store %arg8[%c0_47, %c0_48], %81 {strides = array<i32>} : memref<8x128xf32, #tpu.memory_space<vmem>>, vector<8x128xf32>,
    %cst_49 = arith.constant 0.000000e+00 : f32
    %83 = vector.broadcast %cst_49 : f32 to vector<2x113xf32>
    %84 = tpu.concatenate %32, %31, %36, %83 in 1 : vector<2x5xf32>, vector<2x5xf32>, vector<2x5xf32>, vector<2x113xf32> -> vector<2x128xf32>
    %85 = vector.shape_cast %84 : vector<2x128xf32> to vector<1x2x128xf32>
    %c0_50 = arith.constant 0 : index
    %c0_51 = arith.constant 0 : index
    %c0_52 = arith.constant 0 : index
    %86 = vector.load %arg9[%c0_50, %c0_51, %c0_52] : memref<1x2x128xf32, #tpu.memory_space<vmem>>, vector<1x2x128xf32>
    tpu.vector_store %arg9[%c0_50, %c0_51, %c0_52], %85 {strides = array<i32>} : memref<1x2x128xf32, #tpu.memory_space<vmem>>, vector<1x2x128xf32>,
    return
  }
  func.func @transform_0(%arg0: i32) -> (i32, i32) {
    %c0_i32 = arith.constant 0 : i32
    %c0_i32_0 = arith.constant 0 : i32
    %c0_i32_1 = arith.constant 0 : i32
    return %c0_i32, %c0_i32_0 : i32, i32
  }
  func.func @transform_1(%arg0: i32) -> (i32, i32) {
    %c0_i32 = arith.constant 0 : i32
    %c0_i32_0 = arith.constant 0 : i32
    %c0_i32_1 = arith.constant 0 : i32
    return %c0_i32, %c0_i32_0 : i32, i32
  }
  func.func @transform_2(%arg0: i32) -> (i32, i32) {
    %c0_i32 = arith.constant 0 : i32
    %c0_i32_0 = arith.constant 0 : i32
    %c0_i32_1 = arith.constant 0 : i32
    return %c0_i32, %c0_i32_0 : i32, i32
  }
  func.func @transform_3(%arg0: i32) -> (i32, i32) {
    %c0_i32 = arith.constant 0 : i32
    %c0_i32_0 = arith.constant 0 : i32
    %c0_i32_1 = arith.constant 0 : i32
    return %c0_i32, %c0_i32_0 : i32, i32
  }
  func.func @transform_4(%arg0: i32) -> (i32, i32) {
    %c0_i32 = arith.constant 0 : i32
    %c0_i32_0 = arith.constant 0 : i32
    return %arg0, %c0_i32 : i32, i32
  }
  func.func @transform_5(%arg0: i32) -> (i32, i32) {
    %c0_i32 = arith.constant 0 : i32
    %c0_i32_0 = arith.constant 0 : i32
    return %arg0, %c0_i32 : i32, i32
  }
  func.func @transform_6(%arg0: i32) -> (i32, i32) {
    %c0_i32 = arith.constant 0 : i32
    %c0_i32_0 = arith.constant 0 : i32
    return %arg0, %c0_i32 : i32, i32
  }
  func.func @transform_7(%arg0: i32) -> (i32, i32) {
    %c0_i32 = arith.constant 0 : i32
    %c0_i32_0 = arith.constant 0 : i32
    return %arg0, %c0_i32 : i32, i32
  }
  func.func @transform_8(%arg0: i32) -> (i32, i32, i32) {
    %c0_i32 = arith.constant 0 : i32
    %c0_i32_0 = arith.constant 0 : i32
    %c0_i32_1 = arith.constant 0 : i32
    return %arg0, %c0_i32, %c0_i32_0 : i32, i32, i32
  }
}

</mosaic_0001>

<bundles_post_ra>
// kernel: eq.18
= control target key start
LH: loop header
LB: loop body
LE: loop exit
PB: predicated region body
PF: predicated region fallthrough
CT: control target
= control target key end

     0   :  { %vm7_vm0 = vcmask 64512   ;;  %vm13_vm1 = vcmask 130112   ;;  %s39_s0 = inlined_call_operand.vmem [shape: s32[2,8], index: 0, kind: input, shape index: {}]   ;;  %s40_s1 = inlined_call_operand.vmem [shape: s32[16], index: 1, kind: output, shape index: {}]  }
   0x1   :  { %v4_v0 = vld [vmem:[%s39_s0] sm:$0x3]  ;;  %s22_s0 = smov 8  }
   0x2   :  { %5 = vst [vmem:[#allocation1] sm:$0x3] %v4_v0 }
   0x9   :  { %v10_v1 = vld [vmem:[#allocation1 + $0x1] sm:$0x1]   ;;  %v6_v2 = vld [vmem:[#allocation1] sm:$0x1]  }
   0xa   :  { %11 = vrot.lane.b32.xlu0 %v10_v1, %s22_s0  ;;  %8 = vst.msk [vmem:[#allocation0] sm:$0x1] %vm7_vm0, %v6_v2  }
  0x7c   :  { %v12_v3 = vpop.permute.xlu0 %11  }
  0x7d   :  { %14 = vst.msk [vmem:[#allocation0] sm:$0x1] %vm13_vm1, %v12_v3  }
  0x84   :  { %v18_v4 = vld [vmem:[#allocation0] sm:$0x1] }
  0x85   :  { %20 = vst [vmem:[%s40_s1] sm:$0x1] %v18_v4 }

// kernel: context_conditioned_policy_forward.1
= control target key start
LH: loop header
LB: loop body
LE: loop exit
PB: predicated region body
PF: predicated region fallthrough
CT: control target
= control target key end

     0   :  { %14 = vsyncpa [#allocation3], 0  ;;  %s2149_s27 = smov 0   ;;  %s2301_s0 = inlined_call_operand.vmem [shape: f32[16,128], index: 0, kind: input, shape index: {}]   ;;  %s2302_s1 = inlined_call_operand.vmem [shape: f32[2,16], index: 1, kind: input, shape index: {}]   ;;  %s2303_s2 = inlined_call_operand.vmem [shape: f32[2,128], index: 2, kind: input, shape index: {}]   ;;  %s2304_s3 = inlined_call_operand.hbm [shape: f32[896,128], index: 3, kind: input, shape index: {}]   ;;  %s2305_s4 = inlined_call_operand.vmem [shape: f32[16,128], index: 4, kind: input, shape index: {}]   ;;  %s2306_s5 = inlined_call_operand.vmem [shape: f32[16,128], index: 5, kind: input, shape index: {}]   ;;  %s2307_s6 = inlined_call_operand.vmem [shape: f32[16,2], index: 6, kind: input, shape index: {}]   ;;  %s2308_s7 = inlined_call_operand.vmem [shape: f32[16,128], index: 7, kind: output, shape index: {0}]   ;;  %s2309_s8 = inlined_call_operand.vmem [shape: f32[2,2,128], index: 8, kind: output, shape index: {1}]  }
   0x1 LB: > { %s2155_s28 = sadd.s32 4294967295, %s2089_s27   ;;  %p1452_p0 = scmp.ge.s32.totalorder %s2089_s27, 1  ;;  %s2089_s27 = sphi %s2149_s27, %s20_s27  }
   0x2   : > { %p239_p1 = scmp.lt.s32.totalorder %s2089_s27, 3  ;;  %s2091_s29 = smov [#allocation2]  }
   0x3   : > { %s260_s30 = sshll.u32 %s2091_s29, 4  ;;  %p2310_p3 = scmp.eq.s32.totalorder %s2155_s28, 0  ;;  %s261_s30 = int_to_ptr.vmem [resolvable:$true] %s260_s30 }
   0x4   : > { %p2159_p2 = pnand %p1452_p0, %p239_p1  ;;  %s2051_s13 = scalar_lea.hbm %s2304_s3, 14336 }
   0x5   : > { %p2052_p6 = scmp.ne.s32.totalorder %s2304_s3, %s2051_s13  ;;  %p2058_p10 = scmp.lt.u32.totalorder %s2051_s13, %s2304_s3 }
   0x6   : > { %s2312_s9 = scalar_select %p2159_p2, 1, 0 }
   0x7   : > { %p2000_p4 = pneg %p2159_p2 }
   0x9   : > { %p2168_p5 = pnand %p2310_p3, %p2000_p4 }
   0xb   : > { %p2053_p7 = pneg %p2168_p5 }
   0xd   : > { %p2054_p8 = pnand %p2053_p7, %p2052_p6 }
   0xf   : > { %p2055_p9 = pneg %p2054_p8 }
  0x11   : > { %p2060_p11 = pnand %p2058_p10, %p2055_p9 }
  0x13   : > { %2063 = shalt.err (!%p2060_p11)
}
  0x14   : > { %s2064_s18 = scalar_lea.vmem %s261_s30, 14336  ;;  %p2072_p1 = scmp.lt.s32.totalorder %s261_s30, %s261_s30 }
  0x15   : > { %p2065_p12 = scmp.ne.s32.totalorder %s261_s30, %s2064_s18  ;;  %p2073_p4 = scmp.lt.s32.totalorder %s2064_s18, %s2064_s18 }
  0x17   : > { %p2067_p13 = pnand %p2065_p12, %p2053_p7  ;;  %p2074_p3 = por %p2073_p4, %p2072_p1 }
  0x19   : > { %p2068_p0 = pneg %p2067_p13 }
  0x1b   : > { %p2075_p2 = pnand %p2074_p3, %p2068_p0 }
  0x1d   : > { %2078 = shalt.err (!%p2075_p2)
}
  0x1e   : > { %s2092_s19 = smov 128   ;;  %s2093_s20 = smov 8  }
  0x1f   : > { %2003 = dma.hbm_to_vmem [thread:$0]  (!%p2168_p5), %s2304_s3, 14336, %s261_s30, [#allocation3], %s2092_s19, %s2092_s19, %s2093_s20  }
  0x20   : > { %p2314_p6 = scmp.ne.s32.totalorder %s2312_s9, 0 }
  0x21   : > { %p2315_p8 = scmp.eq.s32.totalorder (!%p2314_p6), %s2155_s28, 0 }
  0x22   : > { %297 = sbr.rel (%p2314_p6) target bundleno = 2322 (0x912), region = 48 }
  0x29   : > { %2084 = dma.done.wait (%p2315_p8), [#allocation3], 14336   ;;  %p2316_p7 = pmov %p2315_p8 }
  0x2a   : > { %v363_v0 = vld [vmem:[#allocation2] sm:$0xff]  ;;  %v364_v1 = vld [vmem:[#allocation2 + $0x8] sm:$0xff]  ;;  %v365_v2 = vld [vmem:[#allocation2 + $0x10] sm:$0xff]  ;;  %vm2095_vm2 = vmmov 0   ;;  %s2097_s29 = smov 123   ;;  %vm685_vm3 = vcmask 130048  }
  0x2b   : > { %2086 = vsyncadd (%p2316_p7), [#allocation3], 4294952960  ;;  %v1820_v3 = vpack.c.bf16 %v364_v1, %v363_v0  ;;  %v366_v4 = vld [vmem:[#allocation2 + $0x18] sm:$0xff]  ;;  %v367_v6 = vld [vmem:[#allocation2 + $0x20] sm:$0xff]  ;;  %p341_p2 = scmp.lt.s32.totalorder %s2155_s28, 1  ;;  %vm843_vm4 = vcmask 1041408  }
  0x2c   : > { %v1824_v5 = vpack.c.bf16 %v366_v4, %v365_v2  ;;  %v368_v7 = vld [vmem:[#allocation2 + $0x28] sm:$0xff]  ;;  %v369_v9 = vld [vmem:[#allocation2 + $0x30] sm:$0xff]  ;;  %v370_v10 = vld [vmem:[#allocation2 + $0x38] sm:$0xff]  ;;  %vm839_vm5 = vcmask 15360   ;;  %vm939_vm6 = vcmask 1044480   ;;  %vm935_vm7 = vcmask 39936  }
  0x2d   : > { %1821 = vmatprep.subr.bf16.mxu0 %v1820_v3  ;;  %v1828_v8 = vpack.c.bf16 %v368_v7, %v367_v6  ;;  %v361_v11 = vld [vmem:[%s2301_s0] sm:$0xff]  ;;  %v457_v13 = vld [vmem:[#allocation2 + $0x88] sm:$0xff]  ;;  %v458_v14 = vld [vmem:[#allocation2 + $0x90] sm:$0xff]  ;;  %v1832_v20 = vpack.c.bf16 %v370_v10, %v369_v9  ;;  %s2318_s28 = smov (!%p341_p2, %s2155_s28), 1  ;;  %s2098_s22 = smov 4   ;;  %vm1287_vm8 = vcmask 31744  }
  0x2e   : > { %1823 = vmatpush3.bf16.msra.mxu0 %v1820_v3  ;;  %1618 = vmatprep.mubr.f32.mxu0 %v361_v11  ;;  %v456_v12 = vld [vmem:[#allocation2 + $0x80] sm:$0xff]  ;;  %v459_v16 = vld [vmem:[#allocation2 + $0x98] sm:$0xff]  ;;  %v461_v19 = vld [vmem:[#allocation2 + $0xa8] sm:$0xff]  ;;  %s2222_s10 = sshll.u32 %s2318_s28, 3  ;;  %s2099_s23 = smov 124   ;;  %vm1325_vm9 = vcmask 80896  }
  0x2f   : > { %1825 = vmatprep.subr.bf16.mxu0 %v1824_v5  ;;  %v1852_v15 = vpack.c.bf16 %v457_v13, %v456_v12  ;;  %v1856_v17 = vpack.c.bf16 %v459_v16, %v458_v14  ;;  %v460_v18 = vld [vmem:[#allocation2 + $0xa0] sm:$0xff]  ;;  %v372_v22 = vld [vmem:[#allocation2 + $0x48] sm:$0xff]  ;;  %v462_v24 = vld [vmem:[#allocation2 + $0xb0] sm:$0xff]  ;;  %s352_s15 = scalar_lea.vmem %s2307_s6, %s2222_s10  ;;  %s344_s18 = scalar_lea.vmem %s2305_s4, %s2222_s10  ;;  %vm1327_vm10 = vcmask 121856   ;;  %vm1307_vm11 = vcmask 64512  }
  0x30   : > { %v371_v21 = vld [vmem:[#allocation2 + $0x40] sm:$0xff]  ;;  %v1860_v23 = vpack.c.bf16 %v461_v19, %v460_v18  ;;  %v463_v25 = vld [vmem:[#allocation2 + $0xb8] sm:$0xff]  ;;  %v373_v27 = vld [vmem:[#allocation2 + $0x50] sm:$0xff]  ;;  %s348_s21 = scalar_lea.vmem %s2306_s5, %s2222_s10  ;;  %s2100_s24 = smov 8   ;;  %vm1309_vm12 = vcmask 97280   ;;  %vm1312_vm13 = vcmask 138240  }
  0x31   : > { %1853 = vmatprep.subr.bf16.mxu1 %v1852_v15  ;;  %v1836_v26 = vpack.c.bf16 %v372_v22, %v371_v21  ;;  %v374_v28 = vld [vmem:[#allocation2 + $0x58] sm:$0xff]  ;;  %v1864_v29 = vpack.c.bf16 %v463_v25, %v462_v24  ;;  %v464_v30 = vld [vmem:[#allocation2 + $0xc0] sm:$0xff]  ;;  %v465_v31 = vld [vmem:[#allocation2 + $0xc8] sm:$0xff]  ;;  %s2101_s25 = smov 5   ;;  %s2102_s26 = smov 17   ;;  %vm1314_vm14 = vcmask 179200  }
  0x32   : > { %1827 = vmatpush3.bf16.msra.mxu0 %v1824_v5  ;;  %1855 = vmatpush3.bf16.msra.mxu1 %v1852_v15  ;;  %v1840_v32 = vpack.c.bf16 %v374_v28, %v373_v27  ;;  %v375_v33 = vld [vmem:[#allocation2 + $0x60] sm:$0xff]  ;;  %v376_v34 = vld [vmem:[#allocation2 + $0x68] sm:$0xff]  ;;  %v1868_v35 = vpack.c.bf16 %v465_v31, %v464_v30  ;;  %v466_v36 = vld [vmem:[#allocation2 + $0xd0] sm:$0xff]  ;;  %s1461_s30 = sshll.u32 %s2318_s28, 1  ;;  %s356_s14 = scalar_lea.vmem %s2308_s7, %s2222_s10 }
  0x33   : > { %1829 = vmatprep.subr.bf16.mxu0 %v1828_v8  ;;  %1857 = vmatprep.subr.bf16.mxu1 %v1856_v17  ;;  %v467_v37 = vld [vmem:[#allocation2 + $0xd8] sm:$0xff]  ;;  %v1844_v38 = vpack.c.bf16 %v376_v34, %v375_v33  ;;  %v377_v39 = vld [vmem:[#allocation2 + $0x70] sm:$0xff]  ;;  %v468_v42 = vld [vmem:[#allocation2 + $0xe0] sm:$0xff]  ;;  %s360_s12 = scalar_lea.vmem %s2309_s8, %s1461_s30 }
  0x34   : > { %v378_v40 = vld [vmem:[#allocation2 + $0x78] sm:$0xff]  ;;  %v1872_v41 = vpack.c.bf16 %v467_v37, %v466_v36  ;;  %v469_v43 = vld [vmem:[#allocation2 + $0xe8] sm:$0xff]  ;;  %v470_v47 = vld [vmem:[#allocation2 + $0xf0] sm:$0xff] }
  0x35   : > { %v1848_v44 = vpack.c.bf16 %v378_v40, %v377_v39  ;;  %v1876_v45 = vpack.c.bf16 %v469_v43, %v468_v42  ;;  %v362_v46 = vld [vmem:[%s2301_s0 + $0x8] sm:$0xff]  ;;  %v471_v48 = vld [vmem:[#allocation2 + $0xf8] sm:$0xff]  ;;  %v549_v50 = vld [vmem:[#allocation2 + $0x100] sm:$0xff] }
  0x36   : > { %1831 = vmatpush3.bf16.msra.mxu0 %v1828_v8  ;;  %1859 = vmatpush3.bf16.msra.mxu1 %v1856_v17  ;;  %v1880_v49 = vpack.c.bf16 %v471_v48, %v470_v47  ;;  %v550_v51 = vld [vmem:[#allocation2 + $0x108] sm:$0xff]  ;;  %v551_v52 = vld [vmem:[#allocation2 + $0x110] sm:$0xff]  ;;  %v552_v54 = vld [vmem:[#allocation2 + $0x118] sm:$0xff] }
  0x37   : > { %1833 = vmatprep.subr.bf16.mxu0 %v1832_v20  ;;  %1861 = vmatprep.subr.bf16.mxu1 %v1860_v23  ;;  %v1884_v53 = vpack.c.bf16 %v550_v51, %v549_v50  ;;  %v1888_v55 = vpack.c.bf16 %v552_v54, %v551_v52  ;;  %v553_v56 = vld [vmem:[#allocation2 + $0x120] sm:$0xff]  ;;  %v554_v57 = vld [vmem:[#allocation2 + $0x128] sm:$0xff]  ;;  %v555_v59 = vld [vmem:[#allocation2 + $0x130] sm:$0xff]  ;;  %v2094_v50 = vmov 0.0|0.0   ;;  %v2096_v51 = vmov 0.0  }
  0x38   : > { %v1892_v58 = vpack.c.bf16 %v554_v57, %v553_v56  ;;  %v556_v60 = vld [vmem:[#allocation2 + $0x138] sm:$0xff]  ;;  %v557_v62 = vld [vmem:[#allocation2 + $0x140] sm:$0xff]  ;;  %v558_v63 = vld [vmem:[#allocation2 + $0x148] sm:$0xff] }
  0x39   : > { %v1896_v61 = vpack.c.bf16 %v556_v60, %v555_v59  ;;  %v1900_v0 = vpack.c.bf16 %v558_v63, %v557_v62  ;;  %v559_v1 = vld [vmem:[#allocation2 + $0x150] sm:$0xff]  ;;  %v560_v2 = vld [vmem:[#allocation2 + $0x158] sm:$0xff]  ;;  %v561_v4 = vld [vmem:[#allocation2 + $0x160] sm:$0xff] }
  0x3a   : > { %1835 = vmatpush3.bf16.msra.mxu0 %v1832_v20  ;;  %1863 = vmatpush3.bf16.msra.mxu1 %v1860_v23  ;;  %v1904_v3 = vpack.c.bf16 %v560_v2, %v559_v1  ;;  %v562_v5 = vld [vmem:[#allocation2 + $0x168] sm:$0xff]  ;;  %v563_v11 = vld [vmem:[#allocation2 + $0x170] sm:$0xff]  ;;  %v564_v12 = vld [vmem:[#allocation2 + $0x178] sm:$0xff] }
  0x3b   : > { %1837 = vmatprep.subr.bf16.mxu0 %v1836_v26  ;;  %1865 = vmatprep.subr.bf16.mxu1 %v1864_v29  ;;  %v1908_v6 = vpack.c.bf16 %v562_v5, %v561_v4  ;;  %v1912_v13 = vpack.c.bf16 %v564_v12, %v563_v11  ;;  %v676_v60 = vld [vmem:[%s2302_s1] sm:$0x3]  ;;  %v1086_v11 = vld [vmem:[#allocation2 + $0x290] sm:$0xff] }
  0x3c   : > { %v835_v1 = vld [vmem:[%s2303_s2] sm:$0x3] }
  0x3e   : > { %1839 = vmatpush3.bf16.msra.mxu0 %v1836_v26  ;;  %1867 = vmatpush3.bf16.msra.mxu1 %v1864_v29 }
  0x3f   : > { %1841 = vmatprep.subr.bf16.mxu0 %v1840_v32  ;;  %1869 = vmatprep.subr.bf16.mxu1 %v1868_v35 }
  0x42   : > { %1843 = vmatpush3.bf16.msra.mxu0 %v1840_v32  ;;  %1871 = vmatpush3.bf16.msra.mxu1 %v1868_v35 }
  0x43   : > { %1845 = vmatprep.subr.bf16.mxu0 %v1844_v38  ;;  %1873 = vmatprep.subr.bf16.mxu1 %v1872_v41 }
  0x46   : > { %1847 = vmatpush3.bf16.msra.mxu0 %v1844_v38  ;;  %1875 = vmatpush3.bf16.msra.mxu1 %v1872_v41 }
  0x47   : > { %1849 = vmatprep.subr.bf16.mxu0 %v1848_v44  ;;  %1877 = vmatprep.subr.bf16.mxu1 %v1876_v45 }
  0x4a   : > { %1851 = vmatpush3.bf16.msra.mxu0 %v1848_v44  ;;  %1879 = vmatpush3.bf16.msra.mxu1 %v1876_v45 }
  0x4b   : > { %1881 = vmatprep.subr.bf16.mxu1 %v1880_v49  ;;  %1885 = vmatprep.subr.bf16.mxu0 %v1884_v53 }
  0x4d   : > { %1619 = vmatmul.mubr.f32.vlgmr.msra.gmra.mrb[0].mxu0 %v362_v46 }
  0x4e   : > { %1883 = vmatpush3.bf16.msra.mxu1 %v1880_v49  ;;  %1887 = vmatpush3.bf16.msra.mxu0 %v1884_v53 }
  0x4f   : > { %1889 = vmatprep.subr.bf16.mxu0 %v1888_v55  ;;  %1705 = vmatprep.subr.mxu1 %v2096_v51 }
  0x52   : > { %1891 = vmatpush3.bf16.msra.mxu0 %v1888_v55 }
  0x53   : > { %1893 = vmatprep.subr.bf16.mxu0 %v1892_v58 }
  0x56   : > { %1895 = vmatpush3.bf16.msra.mxu0 %v1892_v58 }
  0x57   : > { %1897 = vmatprep.subr.bf16.mxu0 %v1896_v61 }
  0x5a   : > { %1899 = vmatpush3.bf16.msra.mxu0 %v1896_v61 }
  0x5b   : > { %1901 = vmatprep.subr.bf16.mxu0 %v1900_v0 }
  0x5e   : > { %1903 = vmatpush3.bf16.msra.mxu0 %v1900_v0 }
  0x5f   : > { %1905 = vmatprep.subr.bf16.mxu0 %v1904_v3 }
  0x62   : > { %1907 = vmatpush3.bf16.msra.mxu0 %v1904_v3 }
  0x63   : > { %1909 = vmatprep.subr.bf16.mxu0 %v1908_v6 }
  0x66   : > { %1911 = vmatpush3.bf16.msra.mxu0 %v1908_v6 }
  0x67   : > { %1913 = vmatprep.subr.bf16.mxu0 %v1912_v13 }
  0x6a   : > { %1915 = vmatpush3.bf16.msra.mxu0 %v1912_v13  ;;  %v1087_v13 = vld [vmem:[#allocation2 + $0x298] sm:$0xff] }
  0x6b   : > { %1916 = vmatprep.subr.bf16.mxu0 %v2094_v50 }
 0x120   : > { %v1620_v7 = vpop.f32.mrb[0].mxu0 }
 0x121   : > { %v445_v8 = vpop.f32.mrb[1].mxu0  ;;  %v455_v10 = vmax.f32 %v1620_v7, 0.0  ;;  %v838_v7 = vld [vmem:[%s352_s15] sm:$0xff] }
 0x122   : > { %v454_v9 = vmax.f32 %v445_v8, 0.0  ;;  %v934_v8 = vld [vmem:[#allocation2 + $0x200] sm:$0x1f] }
 0x124   : > { %1653 = vmatprep.mubr.f32.mxu1 %v454_v9  ;;  %v1084_v9 = vld [vmem:[#allocation2 + $0x280] sm:$0xff] }
 0x125   : > { %1654 = vmatmul.mubr.f32.vlgmr.msra.gmra.mrb[0].mxu1 %v455_v10  ;;  %v1085_v10 = vld [vmem:[#allocation2 + $0x288] sm:$0xff] }
 0x126   : > { %1707 = vmatprep.mubr.msk.f32.mxu1 %vm2095_vm2, %v2096_v51  ;;  %v1947_v12 = vpack.c.bf16 %v1085_v10, %v1084_v9  ;;  %v1178_v10 = vld [vmem:[#allocation2 + $0x338] sm:$0xff] }
 0x1f8   : > { %v1655_v14 = vpop.f32.mrb[0].mxu1 }
 0x1f9   : > { %v538_v15 = vpop.f32.mrb[1].mxu1  ;;  %v548_v17 = vmax.f32 %v1655_v14, 0.0  ;;  %v1950_v14 = vpack.c.bf16 %v1087_v13, %v1086_v11  ;;  %v1180_v13 = vld [vmem:[#allocation2 + $0x348] sm:$0xff] }
 0x1fa   : > { %v547_v16 = vmax.f32 %v538_v15, 0.0  ;;  %v1088_v15 = vld [vmem:[#allocation2 + $0x2a0] sm:$0xff] }
 0x1fc   : > { %1688 = vmatprep.mubr.f32.mxu0 %v547_v16  ;;  %v1089_v16 = vld [vmem:[#allocation2 + $0x2a8] sm:$0xff] }
 0x1fd   : > { %1689 = vmatmul.mubr.f32.vlgmr.msra.gmra.mrb[2].mxu0 %v548_v17  ;;  %v1953_v17 = vpack.c.bf16 %v1089_v16, %v1088_v15  ;;  %v1181_v15 = vld [vmem:[#allocation2 + $0x350] sm:$0xff]  ;;  %v1182_v16 = vld [vmem:[#allocation2 + $0x358] sm:$0xff] }
 0x1fe   : > { %1695 = vmatprep.mubr.msk.f32.mxu0 %vm2095_vm2, %v2096_v51 }
 0x2d0   : > { %v1690_v18 = vpop.f32.mrb[2].mxu0 }
 0x2d1   : > { %v643_v19 = vand.u32 2147483647, %v1690_v18  ;;  %v631_v20 = vpop.f32.mrb[3].mxu0  ;;  %v641_v42 = vmax.f32 %v1690_v18, 0.0 }
 0x2d2   : > { %v642_v21 = vand.u32 2147483647, %v631_v20  ;;  %v640_v44 = vmax.f32 %v631_v20, 0.0 }
 0x2d3   : > { %v645_v22 = vsub.f32 0.0, %v643_v19  ;;  %v1091_v19 = vld [vmem:[#allocation2 + $0x2b8] sm:$0xff] }
 0x2d4   : > { %v644_v23 = vsub.f32 0.0, %v642_v21  ;;  %v1092_v21 = vld [vmem:[#allocation2 + $0x2c0] sm:$0xff] }
 0x2d5   : > { %v648_v24 = vmul.f32 1.442695, %v645_v22  ;;  %v1093_v22 = vld [vmem:[#allocation2 + $0x2c8] sm:$0xff] }
 0x2d6   : > { %v646_v25 = vmul.f32 1.442695, %v644_v23  ;;  %v1959_v23 = vpack.c.bf16 %v1093_v22, %v1092_v21 }
 0x2d7   : > { %2027 = vpow2.f32 %v648_v24  ;;  %v1094_v24 = vld [vmem:[#allocation2 + $0x2d0] sm:$0xff] }
 0x2d8   : > { %2029 = vpow2.f32 %v646_v25  ;;  %v1095_v25 = vld [vmem:[#allocation2 + $0x2d8] sm:$0xff] }
 0x2e1   : > { %v2028_v26 = vpop.eup %2027 }
 0x2e2   : > { %v2030_v27 = vpop.eup %2029  ;;  %v659_v28 = vadd.f32 1.0, %v2028_v26  ;;  %v662_v30 = vmul.f32 -0.5, %v2028_v26  ;;  %v665_v33 = vand.u32 2147483647, %v2028_v26 }
 0x2e3   : > { %v650_v29 = vadd.f32 1.0, %v2030_v27  ;;  %v653_v31 = vmul.f32 -0.5, %v2030_v27  ;;  %v656_v35 = vand.u32 2147483647, %v2030_v27 }
 0x2e4   : > { %2031 = vlog2.f32 %v659_v28  ;;  %v663_v32 = vadd.f32 1.0, %v662_v30  ;;  %vm666_vm0 = vcmp.lt.f32.partialorder %v665_v33, 0.0004427343  ;;  %v1097_v28 = vld [vmem:[#allocation2 + $0x2e8] sm:$0xff]  ;;  %v918_v30 = vld [vmem:[#allocation2 + $0x180] sm:$0xff]  ;;  %v920_v33 = vld [vmem:[#allocation2 + $0x190] sm:$0xff] }
 0x2e5   : > { %2033 = vlog2.f32 %v650_v29  ;;  %v654_v34 = vadd.f32 1.0, %v653_v31  ;;  %vm657_vm1 = vcmp.lt.f32.partialorder %v656_v35, 0.0004427343  ;;  %v919_v31 = vld [vmem:[#allocation2 + $0x188] sm:$0xff] }
 0x2e6   : > { %v664_v39 = vmul.f32 %v2028_v26, %v663_v32  ;;  %v1962_v26 = vpack.c.bf16 %v1095_v25, %v1094_v24  ;;  %v1923_v32 = vpack.c.bf16 %v919_v31, %v918_v30  ;;  %v1185_v24 = vld [vmem:[#allocation2 + $0x370] sm:$0xff]  ;;  %v1186_v25 = vld [vmem:[#allocation2 + $0x378] sm:$0xff] }
 0x2e7   : > { %v655_v41 = vmul.f32 %v2030_v27, %v654_v34  ;;  %v1096_v27 = vld [vmem:[#allocation2 + $0x2e0] sm:$0xff]  ;;  %v921_v34 = vld [vmem:[#allocation2 + $0x198] sm:$0xff] }
 0x2e8   : > { %v1965_v29 = vpack.c.bf16 %v1097_v28, %v1096_v27  ;;  %v1261_v27 = vld [vmem:[%s348_s21] sm:$0xff] }
 0x2e9   : > { %1263 = vrot.lane.b32.xlu1 %v1261_v27, %s2098_s22 }
 0x2ee   : > { %v2032_v36 = vpop.eup %2031 }
 0x2ef   : > { %v2034_v37 = vpop.eup %2033  ;;  %v661_v38 = vmul.f32 0.6931472, %v2032_v36 }
 0x2f0   : > { %v652_v40 = vmul.f32 0.6931472, %v2034_v37  ;;  %v1926_v37 = vpack.c.bf16 %v921_v34, %v920_v33 }
 0x2f1   : > { %v667_v43 = vsel %vm666_vm0, %v664_v39, %v661_v38  ;;  %v922_v38 = vld [vmem:[#allocation2 + $0x1a0] sm:$0xff]  ;;  %v923_v39 = vld [vmem:[#allocation2 + $0x1a8] sm:$0xff] }
 0x2f2   : > { %v658_v45 = vsel %vm657_vm1, %v655_v41, %v652_v40  ;;  %v669_v46 = vadd.f32 %v667_v43, %v641_v42  ;;  %v1929_v40 = vpack.c.bf16 %v923_v39, %v922_v38  ;;  %v924_v41 = vld [vmem:[#allocation2 + $0x1b0] sm:$0xff]  ;;  %v925_v42 = vld [vmem:[#allocation2 + $0x1b8] sm:$0xff] }
 0x2f3   : > { %v668_v47 = vadd.f32 %v658_v45, %v640_v44  ;;  %v1932_v43 = vpack.c.bf16 %v925_v42, %v924_v41  ;;  %v926_v44 = vld [vmem:[#allocation2 + $0x1c0] sm:$0xff]  ;;  %v927_v45 = vld [vmem:[#allocation2 + $0x1c8] sm:$0xff] }
 0x2f4   : > { %v671_v49 = vmax.f32 %v669_v46, 1e-07  ;;  %v1935_v46 = vpack.c.bf16 %v927_v45, %v926_v44 }
 0x2f5   : > { %v670_v48 = vmax.f32 %v668_v47, 1e-07  ;;  %v928_v47 = vld [vmem:[#allocation2 + $0x1d0] sm:$0xff] }
 0x2f7   : > { %2035 = vrcp.f32 %v670_v48  ;;  %v929_v48 = vld [vmem:[#allocation2 + $0x1d8] sm:$0xff] }
 0x2f8   : > { %2037 = vrcp.f32 %v671_v49  ;;  %v1938_v49 = vpack.c.bf16 %v929_v48, %v928_v47 }
 0x301   : > { %v2036_v52 = vpop.eup %2035 }
 0x302   : > { %679 = vrot.lane.b32.xlu0 %v2036_v52, %s2097_s29  ;;  %v2038_v53 = vpop.eup %2037  ;;  %v930_v52 = vld [vmem:[#allocation2 + $0x1e0] sm:$0xff] }
 0x306   : > { %681 = vrot.lane.b32.xlu0 %v2038_v53, %s2097_s29  ;;  %v931_v53 = vld [vmem:[#allocation2 + $0x1e8] sm:$0xff]  ;;  %s2103_s29 = smov 10  }
 0x374   : > { %v680_v54 = vpop.permute.xlu0 %679 }
 0x375   : > { %v759_v56 = vmul.f32 %v680_v54, %v631_v20 }
 0x378   : > { %v682_v55 = vpop.permute.xlu0 %681 }
 0x379   : > { %v1917_v57 = vpack.c.bf16 %v682_v55, %v680_v54  ;;  %v760_v58 = vmul.f32 %v1690_v18, %v682_v55  ;;  %v1090_v18 = vld [vmem:[#allocation2 + $0x2b0] sm:$0xff]  ;;  %v1941_v54 = vpack.c.bf16 %v931_v53, %v930_v52 }
 0x37a   : > { %v1956_v20 = vpack.c.bf16 %v1091_v19, %v1090_v18  ;;  %v932_v55 = vld [vmem:[#allocation2 + $0x1f0] sm:$0xff]  ;;  %v1183_v18 = vld [vmem:[#allocation2 + $0x360] sm:$0xff]  ;;  %v1184_v19 = vld [vmem:[#allocation2 + $0x368] sm:$0xff] }
 0x37b   : > { %v1920_v59 = vpack.c.bf16 %v760_v58, %v759_v56  ;;  %1918 = vmatpush3.bf16.msra.mxu0 %v1917_v57  ;;  %v933_v56 = vld [vmem:[#allocation2 + $0x1f8] sm:$0xff]  ;;  %v917_v58 = vld [vmem:[%s344_s18] sm:$0xff] }
 0x37c   : > { %1919 = vmatprep.subr.bf16.mxu0 %v2094_v50  ;;  %v1944_v57 = vpack.c.bf16 %v933_v56, %v932_v55 }
 0x37e   : > { %1696 = vmatmul.mubr.msk.f32.vlgmr.msra.gmra.mrb[4].mxu0 %vm685_vm3, %v676_v60 }
 0x37f   : > { %1921 = vmatpush3.bf16.msra.mxu0 %v1920_v59  ;;  %1702 = vmatprep.mubr.msk.f32.mxu0 %vm2095_vm2, %v2096_v51  ;;  %v1098_v59 = vld [vmem:[#allocation2 + $0x2f0] sm:$0xff] }
 0x380   : > { %1946 = vmatprep.subr.bf16.mxu0 %v2094_v50 }
 0x382   : > { %1703 = vmatmul.mubr.msk.f32.vlgmr.msra.gmra.mrb[6].mxu0 %vm685_vm3, %v676_v60  ;;  %v1099_v60 = vld [vmem:[#allocation2 + $0x2f8] sm:$0xff] }
 0x383   : > { %1782 = vmatprep.mubr.msk.f32.mxu0 %vm2095_vm2, %v2096_v51  ;;  %1948 = vmatpush3.bf16.msra.mxu0 %v1947_v12  ;;  %v1179_v12 = vld [vmem:[#allocation2 + $0x340] sm:$0xff] }
 0x384   : > { %1949 = vmatprep.subr.bf16.mxu0 %v2094_v50 }
 0x387   : > { %1951 = vmatpush3.bf16.msra.mxu0 %v1950_v14  ;;  %v1983_v14 = vpack.c.bf16 %v1180_v13, %v1179_v12 }
 0x388   : > { %1952 = vmatprep.subr.bf16.mxu0 %v2094_v50 }
 0x38b   : > { %1954 = vmatpush3.bf16.msra.mxu0 %v1953_v17  ;;  %v1986_v17 = vpack.c.bf16 %v1182_v16, %v1181_v15 }
 0x38c   : > { %1955 = vmatprep.subr.bf16.mxu0 %v2094_v50 }
 0x38f   : > { %1957 = vmatpush3.bf16.msra.mxu0 %v1956_v20  ;;  %v1989_v20 = vpack.c.bf16 %v1184_v19, %v1183_v18 }
 0x390   : > { %1958 = vmatprep.subr.bf16.mxu0 %v2094_v50 }
 0x393   : > { %1960 = vmatpush3.bf16.msra.mxu0 %v1959_v23 }
 0x394   : > { %1961 = vmatprep.subr.bf16.mxu0 %v2094_v50 }
 0x397   : > { %1963 = vmatpush3.bf16.msra.mxu0 %v1962_v26  ;;  %v1992_v26 = vpack.c.bf16 %v1186_v25, %v1185_v24 }
 0x398   : > { %1964 = vmatprep.subr.bf16.mxu0 %v2094_v50 }
 0x39b   : > { %1966 = vmatpush3.bf16.msra.mxu0 %v1965_v29 }
 0x39c   : > { %1967 = vmatprep.subr.bf16.mxu0 %v2094_v50 }
 0x451   : > { %v755_v61 = vpop.f32.mrb[4].mxu0 }
 0x452   : > { %2039 = vrcp.f32 %v755_v61  ;;  %v1697_v62 = vpop.f32.mrb[5].mxu0 }
 0x453   : > { %2041 = vrsqrt.f32 %v755_v61  ;;  %v1968_v61 = vpack.c.bf16 %v1099_v60, %v1098_v59  ;;  %v1171_v62 = vld [vmem:[#allocation2 + $0x300] sm:$0xff] }
 0x455   : > { %v827_v63 = vpop.f32.mrb[6].mxu0  ;;  %1969 = vmatpush3.bf16.msra.mxu0 %v1968_v61 }
 0x456   : > { %v1704_v0 = vpop.f32.mrb[7].mxu0 }
 0x457   : > { %v1173_v0 = vld [vmem:[#allocation2 + $0x310] sm:$0xff] }
 0x45c   : > { %v2227_v2 = vpop.eup %2039 }
 0x45d   : > { %v2042_v3 = vpop.eup %2041  ;;  %v2230_v4 = vmul.f32 %v2227_v2, %v827_v63  ;;  %v1172_v63 = vld [vmem:[#allocation2 + $0x308] sm:$0xff] }
 0x45e   : > { %v836_v5 = vmul.f32 %v2042_v3, %v835_v1  ;;  %v1971_v1 = vpack.c.bf16 %v1172_v63, %v1171_v62  ;;  %v1174_v3 = vld [vmem:[#allocation2 + $0x318] sm:$0xff] }
 0x460   : > { %v2237_v6 = vadd.f32 %v836_v5, %v2230_v4  ;;  %v1974_v5 = vpack.c.bf16 %v1174_v3, %v1173_v0 }
 0x462   : > { %1706 = vmatpush3.msk.msra.mxu1 %vm843_vm4, %v2237_v6 }
 0x463   : > { %1708 = vmatmul.mubr.msk.f32.vlgmr.msra.gmra.mrb[2].mxu1 %vm839_vm5, %v838_v7  ;;  %1710 = vmatprep.subr.mxu1 %v2096_v51  ;;  %v1175_v7 = vld [vmem:[#allocation2 + $0x320] sm:$0xff] }
 0x464   : > { %1711 = vmatpush3.msk.msra.mxu1 %vm939_vm6, %v934_v8  ;;  %1712 = vmatprep.mubr.msk.f32.mxu1 %vm2095_vm2, %v2096_v51  ;;  %v1176_v8 = vld [vmem:[#allocation2 + $0x328] sm:$0xff] }
 0x465   : > { %1922 = vmatprep.subr.bf16.mxu1 %v2094_v50  ;;  %v1977_v9 = vpack.c.bf16 %v1176_v8, %v1175_v7 }
 0x536   : > { %v2251_v35 = vpop.f32.mrb[2].mxu1 }
 0x537   : > { %1713 = vmatmul.mubr.msk.f32.vlgmr.msra.gmra.mrb[4].mxu1 %vm935_vm7, %v2251_v35  ;;  %v1709_v36 = vpop.f32.mrb[3].mxu1 }
 0x538   : > { %1924 = vmatpush3.bf16.msra.mxu1 %v1923_v32  ;;  %1747 = vmatprep.mubr.msk.f32.mxu1 %vm2095_vm2, %v2096_v51  ;;  %v1264_v36 = vpop.permute.xlu1 %1263 }
 0x539   : > { %1925 = vmatprep.subr.bf16.mxu1 %v2094_v50 }
 0x53c   : > { %1927 = vmatpush3.bf16.msra.mxu1 %v1926_v37 }
 0x53d   : > { %1928 = vmatprep.subr.bf16.mxu1 %v2094_v50 }
 0x540   : > { %1930 = vmatpush3.bf16.msra.mxu1 %v1929_v40 }
 0x541   : > { %1931 = vmatprep.subr.bf16.mxu1 %v2094_v50 }
 0x544   : > { %1933 = vmatpush3.bf16.msra.mxu1 %v1932_v43 }
 0x545   : > { %1934 = vmatprep.subr.bf16.mxu1 %v2094_v50 }
 0x548   : > { %1936 = vmatpush3.bf16.msra.mxu1 %v1935_v46  ;;  %v1273_v46 = vmul.f32 -0.5, %v1261_v27 }
 0x549   : > { %1937 = vmatprep.subr.bf16.mxu1 %v2094_v50 }
 0x54a   : > { %v1274_v47 = vmul.f32 %v1273_v46, %v1261_v27 }
 0x54c   : > { %1939 = vmatpush3.bf16.msra.mxu1 %v1938_v49 }
 0x54d   : > { %1940 = vmatprep.subr.bf16.mxu1 %v2094_v50 }
 0x550   : > { %1942 = vmatpush3.bf16.msra.mxu1 %v1941_v54 }
 0x551   : > { %1943 = vmatprep.subr.bf16.mxu1 %v2094_v50 }
 0x554   : > { %1945 = vmatpush3.bf16.msra.mxu1 %v1944_v57 }
 0x555   : > { %1970 = vmatprep.subr.bf16.mxu1 %v2094_v50 }
 0x557   : > { %1748 = vmatmul.mubr.f32.vlgmr.msra.gmra.mrb[4].mxu1 %v917_v58 }
 0x558   : > { %1817 = vmatprep.mubr.msk.f32.mxu1 %vm2095_vm2, %v2096_v51  ;;  %1972 = vmatpush3.bf16.msra.mxu1 %v1971_v1  ;;  %v1177_v51 = vld [vmem:[#allocation2 + $0x330] sm:$0xff] }
 0x559   : > { %1973 = vmatprep.subr.bf16.mxu1 %v2094_v50  ;;  %v1980_v11 = vpack.c.bf16 %v1178_v10, %v1177_v51 }
 0x55c   : > { %1975 = vmatpush3.bf16.msra.mxu1 %v1974_v5 }
 0x55d   : > { %1976 = vmatprep.subr.bf16.mxu1 %v2094_v50 }
 0x560   : > { %1978 = vmatpush3.bf16.msra.mxu1 %v1977_v9 }
 0x561   : > { %1979 = vmatprep.subr.bf16.mxu1 %v2094_v50 }
 0x564   : > { %1981 = vmatpush3.bf16.msra.mxu1 %v1980_v11 }
 0x565   : > { %1982 = vmatprep.subr.bf16.mxu1 %v2094_v50 }
 0x568   : > { %1984 = vmatpush3.bf16.msra.mxu1 %v1983_v14 }
 0x569   : > { %1985 = vmatprep.subr.bf16.mxu1 %v2094_v50 }
 0x56c   : > { %1987 = vmatpush3.bf16.msra.mxu1 %v1986_v17 }
 0x56d   : > { %1988 = vmatprep.subr.bf16.mxu1 %v2094_v50 }
 0x570   : > { %1990 = vmatpush3.bf16.msra.mxu1 %v1989_v20 }
 0x571   : > { %1991 = vmatprep.subr.bf16.mxu1 %v2094_v50 }
 0x574   : > { %1993 = vmatpush3.bf16.msra.mxu1 %v1992_v26 }
 0x62a   : > { %v1079_v21 = vpop.f32.mrb[4].mxu1 }
 0x62b   : > { %v1083_v22 = vmax.f32 %v1079_v21, 0.0  ;;  %v1749_v23 = vpop.f32.mrb[5].mxu1 }
 0x62d   : > { %1783 = vmatmul.mubr.f32.vlgmr.msra.gmra.mrb[8].mxu0 %v1083_v22 }
 0x700   : > { %v1166_v28 = vpop.f32.mrb[8].mxu0 }
 0x701   : > { %v1170_v29 = vmax.f32 %v1166_v28, 0.0  ;;  %v1784_v30 = vpop.f32.mrb[9].mxu0 }
 0x703   : > { %1818 = vmatmul.mubr.f32.vlgmr.msra.gmra.mrb[6].mxu1 %v1170_v29 }
 0x7d6   : > { %v1253_v50 = vpop.f32.mrb[6].mxu1 }
 0x7d7   : > { %v1257_v31 = vmax.f32 %v1253_v50, -20.0  ;;  %v1819_v32 = vpop.f32.mrb[7].mxu1 }
 0x7d9   : > { %v1258_v33 = vmin.f32 %v1257_v31, 2.0 }
 0x7db   : > { %1276 = vrot.lane.b32.xlu0 %v1258_v33, %s2099_s23  ;;  %v1259_v34 = vmul.f32 1.442695, %v1258_v33 }
 0x7dd   : > { %2043 = vpow2.f32 %v1259_v34 }
 0x7de   : > { %2045 = vtanh.f32 %v1253_v50 }
 0x7e7   : > { %v2044_v37 = vpop.eup %2043 }
 0x7e8   : > { %v1266_v38 = vmul.f32 %v2044_v37, %v1264_v36  ;;  %v2046_v41 = vpop.eup %2045 }
 0x7ea   : > { %1268 = vrot.lane.b32.xlu1 %v1266_v38, %s2099_s23 }
 0x84d   : > { %v1277_v48 = vpop.permute.xlu0 %1276 }
 0x84e   : > { %v1279_v49 = vsub.f32 %v1274_v47, %v1277_v48 }
 0x850   : > { %v1468_v53 = vadd.f32 -0.9189385, %v1279_v49 }
 0x85c   : > { %v1269_v39 = vpop.permute.xlu1 %1268 }
 0x85d   : > { %v1271_v40 = vadd.f32 %v1269_v39, %v1253_v50 }
 0x85f   : > { %2047 = vtanh.f32 %v1271_v40  ;;  %1293 = vrot.lane.b32.xlu0 %v1271_v40, %s2098_s22 }
 0x863   : > { %1297 = vrot.lane.b32.xlu0 %v2046_v41, %s2100_s24 }
 0x867   : > { %1300 = vrot.lane.b32.xlu0 %v1258_v33, %s2100_s24 }
 0x869   : > { %v2048_v42 = vpop.eup %2047 }
 0x86a   : > { %v1281_v43 = vmul.f32 %v2048_v42, %v2048_v42 }
 0x86b   : > { %1318 = vrot.lane.b32.xlu0 %v2227_v2, %s2101_s25 }
 0x86c   : > { %v1282_v44 = vsub.f32 1.0, %v1281_v43 }
 0x86e   : > { %v1283_v45 = vadd.f32 1e-06, %v1282_v44 }
 0x86f   : > { %1303 = vrot.lane.b32.xlu0 %v2251_v35, %s2102_s26 }
 0x870   : > { %2049 = vlog2.f32 %v1283_v45 }
 0x873   : > { %1321 = vrot.lane.b32.xlu0 %v2237_v6, %s2103_s29 }
 0x87a   : > { %v2050_v52 = vpop.eup %2049 }
 0x87b   : > { %v1285_v54 = vmul.f32 0.6931472, %v2050_v52 }
 0x87d   : > { %v1286_v55 = vsub.f32 %v1468_v53, %v1285_v54 }
 0x87f   : > { %v1288_v2 = vsel %vm1287_vm8, %v1286_v55, 0.0 }
 0x880   : > { %1289 = vadd.xlane.f32.xlu1 %v1288_v2 }
 0x8d1   : > { %v1294_v56 = vpop.permute.xlu0 %1293 }
 0x8d2   : > { %v1306_v63 = vsel %vm1287_vm8, %v2048_v42, %v1294_v56 }
 0x8d5   : > { %v1298_v57 = vpop.permute.xlu0 %1297 }
 0x8d6   : > { %v1308_v0 = vsel %vm1307_vm11, %v1306_v63, %v1298_v57 }
 0x8d9   : > { %v1301_v58 = vpop.permute.xlu0 %1300 }
 0x8da   : > { %v1310_v1 = vsel %vm1309_vm12, %v1308_v0, %v1301_v58 }
 0x8dd   : > { %v1319_v35 = vpop.permute.xlu0 %1318 }
 0x8de   : > { %v1324_v6 = vsel %vm935_vm7, %v2230_v4, %v1319_v35 }
 0x8e1   : > { %v1304_v59 = vpop.permute.xlu0 %1303 }
 0x8e5   : > { %v1322_v60 = vpop.permute.xlu0 %1321 }
 0x8e6   : > { %v1326_v61 = vsel %vm1325_vm9, %v1324_v6, %v1322_v60 }
 0x8e7   : > { %v1328_v62 = vsel %vm1327_vm10, %v1326_v61, 0.0 }
 0x8e8   : > { %1329 = vst [vmem:[%s360_s12] sm:$0x3] %v1328_v62 }
 0x90d   : > { %v1290_v3 = vpop.xlane.xlu1 %1289 }
 0x90e   : > { %v1311_v4 = vsel %vm685_vm3, %v1310_v1, %v1290_v3 }
 0x90f   : > { %v1313_v5 = vsel %vm1312_vm13, %v1311_v4, %v1304_v59 }
 0x910   : > { %v1315_v7 = vsel %vm1314_vm14, %v1313_v5, 0.0 }
 0x911   : > { %1316 = vst [vmem:[%s356_s14] sm:$0xff] %v1315_v7 }
 0x912 PF: > { %s20_s27 = sadd.s32 1, %s2089_s27  }
 0x913   : > { %p17_p3 = scmp.ge.s32.totalorder %s20_s27, 4  }
 0x915   :  { %19 = sbr.rel (!%p17_p3) target bundleno = 1 (0x1), region = 101 }
 0x91c   :  { %1363 = vsyncpa [#allocation3], 1 }
 0x91d   :  { %1365 = vsyncpa [#allocation3 + $0x1], 1 }

</bundles_post_ra>
